<compile_context>
chip_gen: v5e
topology: v5e:2x2
jax: 0.10.0
libtpu: 0.0.40
codegen_flags: <defaults>
</compile_context>

<pallas_src>
import functools
import math

import jax
import jax.numpy as jnp
from jax.experimental import pallas as pl
from jax.experimental.pallas import tpu as pltpu


# ----------------------------------------------------------------------------- helpers
def _round_up(x, m):
    return (x + m - 1) // m * m


def _pad2d(a, rows, cols):
    return jnp.pad(a, ((0, rows - a.shape[0]), (0, cols - a.shape[1])))


def _pad_row(a, cols):
    """1-D (n,) -> zero padded (1, cols)."""
    return jnp.pad(a, (0, cols - a.shape[0])).reshape(1, cols)


@functools.lru_cache(maxsize=1)
def _vmem_limit_bytes():
    """Per-generation scoped-VMEM budget (v7x only has 64 MiB per TensorCore)."""
    try:
        kind = jax.devices()[0].device_kind.lower()
    except Exception:  # pragma: no cover - defensive
        kind = ""
    if "v7" in kind:
        return 48 * 1024 * 1024
    return 100 * 1024 * 1024          # v5e / v6e: 128 MiB physical VMEM


def _pick_tm(M, tm_max):
    """Largest token tile <= tm_max (mult of 8) minimizing padding waste,
    preferring >=2 tiles so both v7x TensorCores get work."""
    tm_max = max(8, min(tm_max, _round_up(M, 8)))
    candidates = range(tm_max, max(8, tm_max // 2) - 1, -8)

    def cost(tm):
        mp = _round_up(M, tm)
        return (mp - M, 0 if mp // tm >= 2 else 1, -tm)

    return min(candidates, key=cost)


def _masked_layer_norm(y, gamma, beta, d_real, eps=1e-5):
    """LayerNorm over a lane-padded last dim via sum / sum-of-squares.

    Padded lanes of `y`, `gamma`, `beta` are zero, so the statistics only see
    the first `d_real` lanes and padded output lanes come out exactly 0.
    """
    inv_d = 1.0 / float(d_real)
    mean = jnp.sum(y, axis=-1, keepdims=True) * inv_d
    ex2 = jnp.sum(y * y, axis=-1, keepdims=True) * inv_d
    var = jnp.maximum(ex2 - mean * mean, 0.0)
    return (y - mean) * jax.lax.rsqrt(var + eps) * gamma + beta


# ----------------------------------------------------------------------------- fused QKV + multi-head attention
def _qkv_attention(x3d_p, w_qkv, b_qkv, mask_bf16, *, d_model, n_heads, d_k,
                   attn_dtype):
    """Fused QKV projection + scaled-dot-product attention, one batch per step.

    x3d_p     : (B, S, dm_p) f32, lane-padded (padded lanes zero)
    w_qkv     : (dm_p, 3*dm_p) bf16, the three projections side by side
    b_qkv     : (1, 3*dm_p) f32
    mask_bf16 : (B, S, S) bf16 flags, 1.0 = masked

    Returns ctx (B, S, dm_p) bf16 (padded lanes zero, lane-dense store) and
    attn (B, H, S, S) `attn_dtype`.
    """
    B, S, dm_p = x3d_p.shape
    n3 = w_qkv.shape[1]
    H, dk = n_heads, d_k
    scale = 1.0 / math.sqrt(float(d_k))

    def kernel(x_ref, w_ref, b_ref, m_ref, ctx_ref, attn_ref):
        xb = x_ref[0].astype(jnp.bfloat16)                       # (S, dm_p)
        qkv = jnp.dot(xb, w_ref[...],
                      preferred_element_type=jnp.float32) + b_ref[...]
        masked = m_ref[0] > 0.5                                  # (S, S)
        ctx_ref[...] = jnp.zeros_like(ctx_ref)                   # zero padded lanes

        for h in range(H):                                       # static unroll
            q_h = qkv[:, h * dk:(h + 1) * dk].astype(jnp.bfloat16)
            k_h = qkv[:, dm_p + h * dk: dm_p + (h + 1) * dk].astype(jnp.bfloat16)
            v_h = qkv[:, 2 * dm_p + h * dk: 2 * dm_p + (h + 1) * dk].astype(jnp.bfloat16)
            s = jax.lax.dot_general(
                q_h, k_h, (((1,), (1,)), ((), ())),
                preferred_element_type=jnp.float32) * scale
            s = jnp.where(masked, -1e9, s)                       # masked_fill_(-1e9)
            s_max = jnp.max(s, axis=-1, keepdims=True)
            p = jnp.exp(s - s_max)
            attn = p / jnp.sum(p, axis=-1, keepdims=True)
            ctx_h = jnp.dot(attn.astype(jnp.bfloat16), v_h,
                            preferred_element_type=jnp.float32)
            ctx_ref[0, :, h * dk:(h + 1) * dk] = ctx_h.astype(ctx_ref.dtype)
            attn_ref[0, h] = attn.astype(attn_ref.dtype)

    return pl.pallas_call(
        kernel,
        out_shape=(jax.ShapeDtypeStruct((B, S, dm_p), jnp.bfloat16),
                   jax.ShapeDtypeStruct((B, H, S, S), attn_dtype)),
        grid_spec=pltpu.PrefetchScalarGridSpec(
            num_scalar_prefetch=0,
            grid=(B,),
            in_specs=[
                pl.BlockSpec((1, S, dm_p), lambda b: (b, 0, 0)),   # x batch slab
                pl.BlockSpec((dm_p, n3), lambda b: (0, 0)),        # W_qkv (bf16)
                pl.BlockSpec((1, n3), lambda b: (0, 0)),           # b_qkv
                pl.BlockSpec((1, S, S), lambda b: (b, 0, 0)),      # mask (bf16 flags)
            ],
            out_specs=[
                pl.BlockSpec((1, S, dm_p), lambda b: (b, 0, 0)),   # ctx (lane-dense)
                pl.BlockSpec((1, H, S, S), lambda b: (b, 0, 0, 0)),
            ],
        ),
        compiler_params=pltpu.CompilerParams(
            dimension_semantics=("parallel",),
            vmem_limit_bytes=_vmem_limit_bytes()),
    )(x3d_p, w_qkv, b_qkv, mask_bf16)


# ----------------------------------------------------------------------------- fused out-proj + LN1 + FFN + LN2
def _attn_out_ffn(ctx2d_p, res2d_p, wo, bo, g1, be1, w1, b1, w2, b2, g2, be2,
                  *, d_model, tm, tkff):
    mp, dm_p = res2d_p.shape
    dff_p = w1.shape[1]
    n_ff = dff_p // tkff

    def kernel(ctx_ref, res_ref, wo_ref, bo_ref, g1_ref, be1_ref,
               w1_ref, b1_ref, w2_ref, b2_ref, g2_ref, be2_ref,
               o_ref, a_ref, abf_ref, acc_ref):
        kff = pl.program_id(1)

        @pl.when(kff == 0)
        def _():
            # attention output projection + residual + LayerNorm #1
            y = jnp.dot(ctx_ref[...], wo_ref[...],
                        preferred_element_type=jnp.float32)
            y = y + bo_ref[...] + res_ref[...]
            a = _masked_layer_norm(y, g1_ref[...], be1_ref[...], d_model)
            a_ref[...] = a
            abf_ref[...] = a.astype(jnp.bfloat16)     # bf16 LHS cached once
            acc_ref[...] = jnp.zeros_like(acc_ref)

        # FFN reduction over one d_ff chunk: h = relu(a @ W1[:,chunk] + b1[chunk])
        h = jnp.dot(abf_ref[...], w1_ref[...],
                    preferred_element_type=jnp.float32) + b1_ref[...]
        h = jnp.maximum(h, 0.0)
        acc_ref[...] += jnp.dot(h.astype(jnp.bfloat16), w2_ref[...],
                                preferred_element_type=jnp.float32)

        @pl.when(kff == pl.num_programs(1) - 1)
        def _():
            # bias + residual (the LN1 output, f32) + LayerNorm #2
            z = acc_ref[...] + b2_ref[...] + a_ref[...]
            o_ref[...] = _masked_layer_norm(
                z, g2_ref[...], be2_ref[...], d_model).astype(o_ref.dtype)

    return pl.pallas_call(
        kernel,
        out_shape=jax.ShapeDtypeStruct((mp, dm_p), jnp.float32),
        grid_spec=pltpu.PrefetchScalarGridSpec(
            num_scalar_prefetch=0,
            grid=(mp // tm, n_ff),
            in_specs=[
                pl.BlockSpec((tm, dm_p), lambda i, k: (i, 0)),    # ctx tile (bf16)
                pl.BlockSpec((tm, dm_p), lambda i, k: (i, 0)),    # residual x (f32)
                pl.BlockSpec((dm_p, dm_p), lambda i, k: (0, 0)),  # W_o (bf16)
                pl.BlockSpec((1, dm_p), lambda i, k: (0, 0)),     # b_o
                pl.BlockSpec((1, dm_p), lambda i, k: (0, 0)),     # LN1 gamma
                pl.BlockSpec((1, dm_p), lambda i, k: (0, 0)),     # LN1 beta
                pl.BlockSpec((dm_p, tkff), lambda i, k: (0, k)),  # W1 chunk (bf16)
                pl.BlockSpec((1, tkff), lambda i, k: (0, k)),     # b1 chunk
                pl.BlockSpec((tkff, dm_p), lambda i, k: (k, 0)),  # W2 chunk (bf16)
                pl.BlockSpec((1, dm_p), lambda i, k: (0, 0)),     # b2
                pl.BlockSpec((1, dm_p), lambda i, k: (0, 0)),     # LN2 gamma
                pl.BlockSpec((1, dm_p), lambda i, k: (0, 0)),     # LN2 beta
            ],
            out_specs=pl.BlockSpec((tm, dm_p), lambda i, k: (i, 0)),
            scratch_shapes=[pltpu.VMEM((tm, dm_p), jnp.float32),   # LN1 output (f32)
                            pltpu.VMEM((tm, dm_p), jnp.bfloat16),  # LN1 output (bf16)
                            pltpu.VMEM((tm, dm_p), jnp.float32)],  # f32 accumulator
        ),
        compiler_params=pltpu.CompilerParams(
            dimension_semantics=("parallel", "arbitrary"),
            vmem_limit_bytes=_vmem_limit_bytes()),
    )(ctx2d_p, res2d_p, wo, bo, g1, be1, w1, b1, w2, b2, g2, be2)


# ----------------------------------------------------------------------------- parameter preparation (do once)
def prepare_encoder_params(params, *, n_heads):
    """Pad channel dims to multiples of 128 and cast matmul weights to bf16.

    Call once and reuse the result across forward passes — these pads/casts are
    weight-sized HBM traffic and should stay off the per-call critical path.
    """
    f32, bf16 = jnp.float32, jnp.bfloat16
    d_model = params["wq"].shape[0]
    d_ff = params["w1"].shape[1]
    dm_p = _round_up(d_model, 128)
    dff_p = _round_up(d_ff, 128)

    w_qkv = jnp.concatenate(
        [_pad2d(params[k].astype(f32), dm_p, dm_p) for k in ("wq", "wk", "wv")],
        axis=1).astype(bf16)
    b_qkv = jnp.concatenate(
        [_pad_row(params[k].astype(f32), dm_p) for k in ("bq", "bk", "bv")], axis=1)

    return dict(
        d_model=d_model, d_ff=d_ff, dm_p=dm_p, dff_p=dff_p, n_heads=n_heads,
        w_qkv=w_qkv, b_qkv=b_qkv,
        wo=_pad2d(params["wo"].astype(f32), dm_p, dm_p).astype(bf16),
        bo=_pad_row(params["bo"].astype(f32), dm_p),
        ln1_g=_pad_row(params["ln1_g"].astype(f32), dm_p),
        ln1_b=_pad_row(params["ln1_b"].astype(f32), dm_p),
        w1=_pad2d(params["w1"].astype(f32), dm_p, dff_p).astype(bf16),
        b1=_pad_row(params["b1"].astype(f32), dff_p),
        w2=_pad2d(params["w2"].astype(f32), dff_p, dm_p).astype(bf16),
        b2=_pad_row(params["b2"].astype(f32), dm_p),
        ln2_g=_pad_row(params["ln2_g"].astype(f32), dm_p),
        ln2_b=_pad_row(params["ln2_b"].astype(f32), dm_p),
    )


# ----------------------------------------------------------------------------- EncoderLayer wrapper
def encoder_layer(x, attn_mask, prep, *, tm=512, tkff=1024,
                  attn_dtype=jnp.float32):
    """x: (B, S, d_model) f32; attn_mask: (B, S, S) bool (True = masked);
    prep: output of prepare_encoder_params.

    Returns (enc_outputs (B, S, d_model) f32, attn (B, n_heads, S, S) attn_dtype).
    """
    B, S, d_model = x.shape
    assert d_model == prep["d_model"]
    H = prep["n_heads"]
    dk = d_model // H
    dm_p, dff_p = prep["dm_p"], prep["dff_p"]
    f32 = jnp.float32

    # FFN chunk size: multiple of 128 dividing the padded d_ff.
    tkff = max(128, min((tkff // 128) * 128, dff_p))
    while dff_p % tkff:
        tkff -= 128

    M = B * S
    tm = _pick_tm(M, tm)
    mp = _round_up(M, tm)

    # Lane-pad activations once (padded lanes are exactly zero).
    x3d_p = jnp.pad(x.astype(f32), ((0, 0), (0, 0), (0, dm_p - d_model)))
    mask_bf16 = attn_mask.astype(jnp.bfloat16)            # 1.0 = masked, 2x less HBM

    # Kernel 1: fused QKV + multi-head attention (ctx lane-dense, bf16).
    ctx, attn = _qkv_attention(x3d_p, prep["w_qkv"], prep["b_qkv"], mask_bf16,
                               d_model=d_model, n_heads=H, d_k=dk,
                               attn_dtype=attn_dtype)

    # Row-pad to the token-tile grid (cheap reshape + pad; no transposes).
    ctx2d_p = jnp.pad(ctx.reshape(M, dm_p), ((0, mp - M), (0, 0)))
    x2d_p = jnp.pad(x3d_p.reshape(M, dm_p), ((0, mp - M), (0, 0)))

    # Kernel 2: fused out-proj + LN1 + FFN + LN2.
    out2d = _attn_out_ffn(
        ctx2d_p, x2d_p,
        prep["wo"], prep["bo"], prep["ln1_g"], prep["ln1_b"],
        prep["w1"], prep["b1"], prep["w2"], prep["b2"],
        prep["ln2_g"], prep["ln2_b"],
        d_model=d_model, tm=tm, tkff=tkff)

    enc_out = out2d[:M, :d_model].reshape(B, S, d_model)
    return enc_out, attn


# ----------------------------------------------------------------------------- demo / self-check
if __name__ == "__main__":
    B, S = 2, 8
    d_model, n_heads, d_ff = 32, 4, 64
    dk = d_model // n_heads

    key = jax.random.PRNGKey(0)
    keys = jax.random.split(key, 16)

    def lin(kw, kb, fan_in, shape_w, shape_b):
        s = 1.0 / math.sqrt(fan_in)
        return (jax.random.uniform(kw, shape_w, jnp.float32, -s, s),
                jax.random.uniform(kb, shape_b, jnp.float32, -s, s))

    x = jax.random.normal(keys[0], (B, S, d_model), jnp.float32)
    wq, bq = lin(keys[1], keys[2], d_model, (d_model, d_model), (d_model,))
    wk, bk = lin(keys[3], keys[4], d_model, (d_model, d_model), (d_model,))
    wv, bv = lin(keys[5], keys[6], d_model, (d_model, d_model), (d_model,))
    wo, bo = lin(keys[7], keys[8], d_model, (d_model, d_model), (d_model,))
    w1, b1 = lin(keys[9], keys[10], d_model, (d_model, d_ff), (d_ff,))
    w2, b2 = lin(keys[11], keys[12], d_ff, (d_ff, d_model), (d_model,))
    ln1_g = 1.0 + 0.1 * jax.random.normal(keys[13], (d_model,), jnp.float32)
    ln1_b = 0.1 * jax.random.normal(keys[14], (d_model,), jnp.float32)
    ln2_g = 1.0 + 0.1 * jax.random.normal(keys[15], (d_model,), jnp.float32)
    ln2_b = jnp.zeros((d_model,), jnp.float32)

    params = dict(wq=wq, bq=bq, wk=wk, bk=bk, wv=wv, bv=bv, wo=wo, bo=bo,
                  w1=w1, b1=b1, w2=w2, b2=b2,
                  ln1_g=ln1_g, ln1_b=ln1_b, ln2_g=ln2_g, ln2_b=ln2_b)
    prep = prepare_encoder_params(params, n_heads=n_heads)

    # encoder self-attention mask: batch 1 masks its last two key positions
    attn_mask = jnp.zeros((B, S, S), dtype=bool).at[1, :, S - 2:].set(True)

    enc_out, attn = encoder_layer(x, attn_mask, prep)
    jax.block_until_ready((enc_out, attn))

    # ---- pure-JAX reference (mirrors the kernel's bf16 MXU operand precision) ----
    bf16 = jnp.bfloat16

    def mm(a, w):
        return jnp.dot(a.astype(bf16), w.astype(bf16),
                       preferred_element_type=jnp.float32)

    def ln(y, g, b):
        mu = y.mean(-1, keepdims=True)
        var = ((y - mu) ** 2).mean(-1, keepdims=True)
        return (y - mu) * jax.lax.rsqrt(var + 1e-5) * g + b

    q_r = (mm(x, wq) + bq).reshape(B, S, n_heads, dk).transpose(0, 2, 1, 3)
    k_r = (mm(x, wk) + bk).reshape(B, S, n_heads, dk).transpose(0, 2, 1, 3)
    v_r = (mm(x, wv) + bv).reshape(B, S, n_heads, dk).transpose(0, 2, 1, 3)
    scores = jnp.einsum("bhqd,bhkd->bhqk", q_r.astype(bf16), k_r.astype(bf16),
                        preferred_element_type=jnp.float32) / math.sqrt(dk)
    scores = jnp.where(attn_mask[:, None, :, :], -1e9, scores)
    attn_ref = jax.nn.softmax(scores, axis=-1)
    ctx_ref = jnp.einsum("bhqk,bhkd->bhqd", attn_ref.astype(bf16),
                         v_r.astype(bf16), preferred_element_type=jnp.float32)
    ctx2d = ctx_ref.transpose(0, 2, 1, 3).reshape(B, S, d_model)
    a_ref = ln(mm(ctx2d, wo) + bo + x, ln1_g, ln1_b)
    h_ref = jnp.maximum(mm(a_ref, w1) + b1, 0.0)
    z_ref = mm(h_ref, w2) + b2 + a_ref
    out_ref = ln(z_ref, ln2_g, ln2_b)

    assert jnp.allclose(attn, attn_ref, atol=5e-3, rtol=5e-3), \
        float(jnp.max(jnp.abs(attn - attn_ref)))
    assert jnp.allclose(enc_out, out_ref, atol=5e-2, rtol=5e-2), \
        float(jnp.max(jnp.abs(enc_out - out_ref)))

    print("KERNEL_OK")
</pallas_src>

<mosaic_0001>
module attributes {stable_mosaic.version = 11 : i64} {
  func.func @kernel(%arg0: i32, %arg1: memref<1x8x128xf32, #tpu.memory_space<vmem>>, %arg2: memref<128x384xbf16, #tpu.memory_space<vmem>>, %arg3: memref<1x384xf32, #tpu.memory_space<vmem>>, %arg4: memref<1x8x8xbf16, #tpu.memory_space<vmem>>, %arg5: memref<1x8x128xbf16, #tpu.memory_space<vmem>>, %arg6: memref<1x4x8x8xf32, #tpu.memory_space<vmem>>) attributes {dimension_semantics = [#tpu.dimension_semantics<parallel>], iteration_bounds = array<i64: 2>, scalar_prefetch = 0 : i64, scratch_operands = 0 : i64, tpu.core_type = #tpu.core_type<tc>, window_params = [{transform_indices = @transform_0, window_bounds = array<i64: 1, 8, 128>}, {pipeline_mode = #tpu.pipeline_mode<synchronous>, transform_indices = @transform_1, window_bounds = array<i64: 128, 384>}, {pipeline_mode = #tpu.pipeline_mode<synchronous>, transform_indices = @transform_2, window_bounds = array<i64: 1, 384>}, {transform_indices = @transform_3, window_bounds = array<i64: 1, 8, 8>}, {transform_indices = @transform_4, window_bounds = array<i64: 1, 8, 128>}, {transform_indices = @transform_5, window_bounds = array<i64: 1, 4, 8, 8>}]} {
    %c0 = arith.constant 0 : index
    %c0_0 = arith.constant 0 : index
    %c0_1 = arith.constant 0 : index
    %0 = vector.load %arg1[%c0, %c0_0, %c0_1] : memref<1x8x128xf32, #tpu.memory_space<vmem>>, vector<1x8x128xf32>
    %1 = vector.shape_cast %0 : vector<1x8x128xf32> to vector<8x128xf32>
    %2 = arith.truncf %1 : vector<8x128xf32> to vector<8x128xbf16>
    %c0_2 = arith.constant 0 : index
    %c0_3 = arith.constant 0 : index
    %3 = vector.load %arg2[%c0_2, %c0_3] : memref<128x384xbf16, #tpu.memory_space<vmem>>, vector<128x384xbf16>
    %cst = arith.constant dense<0.000000e+00> : vector<8x384xf32>
    %4 = tpu.matmul %2, %3, %cst {dimension_numbers = #tpu.dot_dimension_numbers<[1], [0], [0], [1], [0, 0, 1, 1], [], []>} : vector<8x128xbf16>, vector<128x384xbf16>, vector<8x384xf32> -> vector<8x384xf32>
    %c0_4 = arith.constant 0 : index
    %c0_5 = arith.constant 0 : index
    %5 = vector.load %arg3[%c0_4, %c0_5] : memref<1x384xf32, #tpu.memory_space<vmem>>, vector<1x384xf32>
    %6 = vector.broadcast %5 : vector<1x384xf32> to vector<8x384xf32>
    %7 = arith.addf %4, %6 : vector<8x384xf32>
    %c0_6 = arith.constant 0 : index
    %c0_7 = arith.constant 0 : index
    %c0_8 = arith.constant 0 : index
    %8 = vector.load %arg4[%c0_6, %c0_7, %c0_8] : memref<1x8x8xbf16, #tpu.memory_space<vmem>>, vector<1x8x8xbf16>
    %9 = vector.shape_cast %8 : vector<1x8x8xbf16> to vector<8x8xbf16>
    %cst_9 = arith.constant 5.000000e-01 : bf16
    %10 = vector.broadcast %cst_9 : bf16 to vector<8x8xbf16>
    %11 = arith.cmpf ogt, %9, %10 : vector<8x8xbf16>
    %cst_10 = arith.constant 0.000000e+00 : bf16
    %12 = vector.broadcast %cst_10 : bf16 to vector<1x8x128xbf16>
    %c0_11 = arith.constant 0 : index
    %c0_12 = arith.constant 0 : index
    %c0_13 = arith.constant 0 : index
    %13 = vector.load %arg5[%c0_11, %c0_12, %c0_13] : memref<1x8x128xbf16, #tpu.memory_space<vmem>>, vector<1x8x128xbf16>
    tpu.vector_store %arg5[%c0_11, %c0_12, %c0_13], %12 {strides = array<i32>} : memref<1x8x128xbf16, #tpu.memory_space<vmem>>, vector<1x8x128xbf16>,
    %14 = vector.extract_strided_slice %7 {offsets = [0, 0], sizes = [8, 8], strides = [1, 1]} : vector<8x384xf32> to vector<8x8xf32>
    %15 = arith.truncf %14 : vector<8x8xf32> to vector<8x8xbf16>
    %16 = vector.extract_strided_slice %7 {offsets = [0, 128], sizes = [8, 8], strides = [1, 1]} : vector<8x384xf32> to vector<8x8xf32>
    %17 = arith.truncf %16 : vector<8x8xf32> to vector<8x8xbf16>
    %18 = vector.extract_strided_slice %7 {offsets = [0, 256], sizes = [8, 8], strides = [1, 1]} : vector<8x384xf32> to vector<8x8xf32>
    %19 = arith.truncf %18 : vector<8x8xf32> to vector<8x8xbf16>
    %cst_14 = arith.constant dense<0.000000e+00> : vector<8x8xf32>
    %20 = tpu.matmul %15, %17, %cst_14 {dimension_numbers = #tpu.dot_dimension_numbers<[1], [1], [0], [0], [0, 0, 1, 0], [], []>} : vector<8x8xbf16>, vector<8x8xbf16>, vector<8x8xf32> -> vector<8x8xf32>
    %cst_15 = arith.constant 0.353553385 : f32
    %21 = vector.broadcast %cst_15 : f32 to vector<8x8xf32>
    %22 = arith.mulf %20, %21 : vector<8x8xf32>
    %cst_16 = arith.constant -1.000000e+09 : f32
    %23 = vector.broadcast %cst_16 : f32 to vector<8x8xf32>
    %24 = arith.select %11, %23, %22 : vector<8x8xi1>, vector<8x8xf32>
    %cst_17 = arith.constant dense<0xFF800000> : vector<8xf32>
    %25 = vector.multi_reduction <maximumf>, %24, %cst_17 [1] : vector<8x8xf32> to vector<8xf32>
    %26 = vector.shape_cast %25 : vector<8xf32> to vector<8x1xf32>
    %27 = vector.broadcast %26 : vector<8x1xf32> to vector<8x8xf32>
    %28 = arith.subf %24, %27 : vector<8x8xf32>
    %29 = math.exp %28 : vector<8x8xf32>
    %cst_18 = arith.constant dense<0.000000e+00> : vector<8xf32>
    %30 = vector.multi_reduction <add>, %29, %cst_18 [1] : vector<8x8xf32> to vector<8xf32>
    %31 = vector.shape_cast %30 : vector<8xf32> to vector<8x1xf32>
    %32 = vector.broadcast %31 : vector<8x1xf32> to vector<8x8xf32>
    %33 = arith.divf %29, %32 : vector<8x8xf32>
    %34 = arith.truncf %33 : vector<8x8xf32> to vector<8x8xbf16>
    %cst_19 = arith.constant dense<0.000000e+00> : vector<8x8xf32>
    %35 = tpu.matmul %34, %19, %cst_19 {dimension_numbers = #tpu.dot_dimension_numbers<[1], [0], [0], [1], [0, 0, 1, 1], [], []>} : vector<8x8xbf16>, vector<8x8xbf16>, vector<8x8xf32> -> vector<8x8xf32>
    %36 = arith.truncf %35 : vector<8x8xf32> to vector<8x8xbf16>
    %c0_20 = arith.constant 0 : index
    %c0_21 = arith.constant 0 : index
    %c0_22 = arith.constant 0 : index
    %37 = vector.load %arg5[%c0_20, %c0_21, %c0_22] : memref<1x8x128xbf16, #tpu.memory_space<vmem>>, vector<1x8x8xbf16>
    %38 = vector.shape_cast %37 : vector<1x8x8xbf16> to vector<8x8xbf16>
    %39 = vector.shape_cast %36 : vector<8x8xbf16> to vector<1x8x8xbf16>
    tpu.vector_store %arg5[%c0_20, %c0_21, %c0_22], %39 {strides = array<i32>} : memref<1x8x128xbf16, #tpu.memory_space<vmem>>, vector<1x8x8xbf16>,
    %c0_23 = arith.constant 0 : index
    %c0_24 = arith.constant 0 : index
    %c0_25 = arith.constant 0 : index
    %c0_26 = arith.constant 0 : index
    %40 = vector.load %arg6[%c0_23, %c0_24, %c0_25, %c0_26] : memref<1x4x8x8xf32, #tpu.memory_space<vmem>>, vector<1x1x8x8xf32>
    %41 = vector.shape_cast %40 : vector<1x1x8x8xf32> to vector<8x8xf32>
    %42 = vector.shape_cast %33 : vector<8x8xf32> to vector<1x1x8x8xf32>
    tpu.vector_store %arg6[%c0_23, %c0_24, %c0_25, %c0_26], %42 {strides = array<i32>} : memref<1x4x8x8xf32, #tpu.memory_space<vmem>>, vector<1x1x8x8xf32>,
    %43 = vector.extract_strided_slice %7 {offsets = [0, 8], sizes = [8, 8], strides = [1, 1]} : vector<8x384xf32> to vector<8x8xf32>
    %44 = arith.truncf %43 : vector<8x8xf32> to vector<8x8xbf16>
    %45 = vector.extract_strided_slice %7 {offsets = [0, 136], sizes = [8, 8], strides = [1, 1]} : vector<8x384xf32> to vector<8x8xf32>
    %46 = arith.truncf %45 : vector<8x8xf32> to vector<8x8xbf16>
    %47 = vector.extract_strided_slice %7 {offsets = [0, 264], sizes = [8, 8], strides = [1, 1]} : vector<8x384xf32> to vector<8x8xf32>
    %48 = arith.truncf %47 : vector<8x8xf32> to vector<8x8xbf16>
    %cst_27 = arith.constant dense<0.000000e+00> : vector<8x8xf32>
    %49 = tpu.matmul %44, %46, %cst_27 {dimension_numbers = #tpu.dot_dimension_numbers<[1], [1], [0], [0], [0, 0, 1, 0], [], []>} : vector<8x8xbf16>, vector<8x8xbf16>, vector<8x8xf32> -> vector<8x8xf32>
    %cst_28 = arith.constant 0.353553385 : f32
    %50 = vector.broadcast %cst_28 : f32 to vector<8x8xf32>
    %51 = arith.mulf %49, %50 : vector<8x8xf32>
    %cst_29 = arith.constant -1.000000e+09 : f32
    %52 = vector.broadcast %cst_29 : f32 to vector<8x8xf32>
    %53 = arith.select %11, %52, %51 : vector<8x8xi1>, vector<8x8xf32>
    %cst_30 = arith.constant dense<0xFF800000> : vector<8xf32>
    %54 = vector.multi_reduction <maximumf>, %53, %cst_30 [1] : vector<8x8xf32> to vector<8xf32>
    %55 = vector.shape_cast %54 : vector<8xf32> to vector<8x1xf32>
    %56 = vector.broadcast %55 : vector<8x1xf32> to vector<8x8xf32>
    %57 = arith.subf %53, %56 : vector<8x8xf32>
    %58 = math.exp %57 : vector<8x8xf32>
    %cst_31 = arith.constant dense<0.000000e+00> : vector<8xf32>
    %59 = vector.multi_reduction <add>, %58, %cst_31 [1] : vector<8x8xf32> to vector<8xf32>
    %60 = vector.shape_cast %59 : vector<8xf32> to vector<8x1xf32>
    %61 = vector.broadcast %60 : vector<8x1xf32> to vector<8x8xf32>
    %62 = arith.divf %58, %61 : vector<8x8xf32>
    %63 = arith.truncf %62 : vector<8x8xf32> to vector<8x8xbf16>
    %cst_32 = arith.constant dense<0.000000e+00> : vector<8x8xf32>
    %64 = tpu.matmul %63, %48, %cst_32 {dimension_numbers = #tpu.dot_dimension_numbers<[1], [0], [0], [1], [0, 0, 1, 1], [], []>} : vector<8x8xbf16>, vector<8x8xbf16>, vector<8x8xf32> -> vector<8x8xf32>
    %65 = arith.truncf %64 : vector<8x8xf32> to vector<8x8xbf16>
    %c0_33 = arith.constant 0 : index
    %c0_34 = arith.constant 0 : index
    %c8 = arith.constant 8 : index
    %66 = vector.load %arg5[%c0_33, %c0_34, %c8] : memref<1x8x128xbf16, #tpu.memory_space<vmem>>, vector<1x8x8xbf16>
    %67 = vector.shape_cast %66 : vector<1x8x8xbf16> to vector<8x8xbf16>
    %68 = vector.shape_cast %65 : vector<8x8xbf16> to vector<1x8x8xbf16>
    tpu.vector_store %arg5[%c0_33, %c0_34, %c8], %68 {strides = array<i32>} : memref<1x8x128xbf16, #tpu.memory_space<vmem>>, vector<1x8x8xbf16>,
    %c0_35 = arith.constant 0 : index
    %c1 = arith.constant 1 : index
    %c0_36 = arith.constant 0 : index
    %c0_37 = arith.constant 0 : index
    %69 = vector.load %arg6[%c0_35, %c1, %c0_36, %c0_37] : memref<1x4x8x8xf32, #tpu.memory_space<vmem>>, vector<1x1x8x8xf32>
    %70 = vector.shape_cast %69 : vector<1x1x8x8xf32> to vector<8x8xf32>
    %71 = vector.shape_cast %62 : vector<8x8xf32> to vector<1x1x8x8xf32>
    tpu.vector_store %arg6[%c0_35, %c1, %c0_36, %c0_37], %71 {strides = array<i32>} : memref<1x4x8x8xf32, #tpu.memory_space<vmem>>, vector<1x1x8x8xf32>,
    %72 = vector.extract_strided_slice %7 {offsets = [0, 16], sizes = [8, 8], strides = [1, 1]} : vector<8x384xf32> to vector<8x8xf32>
    %73 = arith.truncf %72 : vector<8x8xf32> to vector<8x8xbf16>
    %74 = vector.extract_strided_slice %7 {offsets = [0, 144], sizes = [8, 8], strides = [1, 1]} : vector<8x384xf32> to vector<8x8xf32>
    %75 = arith.truncf %74 : vector<8x8xf32> to vector<8x8xbf16>
    %76 = vector.extract_strided_slice %7 {offsets = [0, 272], sizes = [8, 8], strides = [1, 1]} : vector<8x384xf32> to vector<8x8xf32>
    %77 = arith.truncf %76 : vector<8x8xf32> to vector<8x8xbf16>
    %cst_38 = arith.constant dense<0.000000e+00> : vector<8x8xf32>
    %78 = tpu.matmul %73, %75, %cst_38 {dimension_numbers = #tpu.dot_dimension_numbers<[1], [1], [0], [0], [0, 0, 1, 0], [], []>} : vector<8x8xbf16>, vector<8x8xbf16>, vector<8x8xf32> -> vector<8x8xf32>
    %cst_39 = arith.constant 0.353553385 : f32
    %79 = vector.broadcast %cst_39 : f32 to vector<8x8xf32>
    %80 = arith.mulf %78, %79 : vector<8x8xf32>
    %cst_40 = arith.constant -1.000000e+09 : f32
    %81 = vector.broadcast %cst_40 : f32 to vector<8x8xf32>
    %82 = arith.select %11, %81, %80 : vector<8x8xi1>, vector<8x8xf32>
    %cst_41 = arith.constant dense<0xFF800000> : vector<8xf32>
    %83 = vector.multi_reduction <maximumf>, %82, %cst_41 [1] : vector<8x8xf32> to vector<8xf32>
    %84 = vector.shape_cast %83 : vector<8xf32> to vector<8x1xf32>
    %85 = vector.broadcast %84 : vector<8x1xf32> to vector<8x8xf32>
    %86 = arith.subf %82, %85 : vector<8x8xf32>
    %87 = math.exp %86 : vector<8x8xf32>
    %cst_42 = arith.constant dense<0.000000e+00> : vector<8xf32>
    %88 = vector.multi_reduction <add>, %87, %cst_42 [1] : vector<8x8xf32> to vector<8xf32>
    %89 = vector.shape_cast %88 : vector<8xf32> to vector<8x1xf32>
    %90 = vector.broadcast %89 : vector<8x1xf32> to vector<8x8xf32>
    %91 = arith.divf %87, %90 : vector<8x8xf32>
    %92 = arith.truncf %91 : vector<8x8xf32> to vector<8x8xbf16>
    %cst_43 = arith.constant dense<0.000000e+00> : vector<8x8xf32>
    %93 = tpu.matmul %92, %77, %cst_43 {dimension_numbers = #tpu.dot_dimension_numbers<[1], [0], [0], [1], [0, 0, 1, 1], [], []>} : vector<8x8xbf16>, vector<8x8xbf16>, vector<8x8xf32> -> vector<8x8xf32>
    %94 = arith.truncf %93 : vector<8x8xf32> to vector<8x8xbf16>
    %c0_44 = arith.constant 0 : index
    %c0_45 = arith.constant 0 : index
    %c16 = arith.constant 16 : index
    %95 = vector.load %arg5[%c0_44, %c0_45, %c16] : memref<1x8x128xbf16, #tpu.memory_space<vmem>>, vector<1x8x8xbf16>
    %96 = vector.shape_cast %95 : vector<1x8x8xbf16> to vector<8x8xbf16>
    %97 = vector.shape_cast %94 : vector<8x8xbf16> to vector<1x8x8xbf16>
    tpu.vector_store %arg5[%c0_44, %c0_45, %c16], %97 {strides = array<i32>} : memref<1x8x128xbf16, #tpu.memory_space<vmem>>, vector<1x8x8xbf16>,
    %c0_46 = arith.constant 0 : index
    %c2 = arith.constant 2 : index
    %c0_47 = arith.constant 0 : index
    %c0_48 = arith.constant 0 : index
    %98 = vector.load %arg6[%c0_46, %c2, %c0_47, %c0_48] : memref<1x4x8x8xf32, #tpu.memory_space<vmem>>, vector<1x1x8x8xf32>
    %99 = vector.shape_cast %98 : vector<1x1x8x8xf32> to vector<8x8xf32>
    %100 = vector.shape_cast %91 : vector<8x8xf32> to vector<1x1x8x8xf32>
    tpu.vector_store %arg6[%c0_46, %c2, %c0_47, %c0_48], %100 {strides = array<i32>} : memref<1x4x8x8xf32, #tpu.memory_space<vmem>>, vector<1x1x8x8xf32>,
    %101 = vector.extract_strided_slice %7 {offsets = [0, 24], sizes = [8, 8], strides = [1, 1]} : vector<8x384xf32> to vector<8x8xf32>
    %102 = arith.truncf %101 : vector<8x8xf32> to vector<8x8xbf16>
    %103 = vector.extract_strided_slice %7 {offsets = [0, 152], sizes = [8, 8], strides = [1, 1]} : vector<8x384xf32> to vector<8x8xf32>
    %104 = arith.truncf %103 : vector<8x8xf32> to vector<8x8xbf16>
    %105 = vector.extract_strided_slice %7 {offsets = [0, 280], sizes = [8, 8], strides = [1, 1]} : vector<8x384xf32> to vector<8x8xf32>
    %106 = arith.truncf %105 : vector<8x8xf32> to vector<8x8xbf16>
    %cst_49 = arith.constant dense<0.000000e+00> : vector<8x8xf32>
    %107 = tpu.matmul %102, %104, %cst_49 {dimension_numbers = #tpu.dot_dimension_numbers<[1], [1], [0], [0], [0, 0, 1, 0], [], []>} : vector<8x8xbf16>, vector<8x8xbf16>, vector<8x8xf32> -> vector<8x8xf32>
    %cst_50 = arith.constant 0.353553385 : f32
    %108 = vector.broadcast %cst_50 : f32 to vector<8x8xf32>
    %109 = arith.mulf %107, %108 : vector<8x8xf32>
    %cst_51 = arith.constant -1.000000e+09 : f32
    %110 = vector.broadcast %cst_51 : f32 to vector<8x8xf32>
    %111 = arith.select %11, %110, %109 : vector<8x8xi1>, vector<8x8xf32>
    %cst_52 = arith.constant dense<0xFF800000> : vector<8xf32>
    %112 = vector.multi_reduction <maximumf>, %111, %cst_52 [1] : vector<8x8xf32> to vector<8xf32>
    %113 = vector.shape_cast %112 : vector<8xf32> to vector<8x1xf32>
    %114 = vector.broadcast %113 : vector<8x1xf32> to vector<8x8xf32>
    %115 = arith.subf %111, %114 : vector<8x8xf32>
    %116 = math.exp %115 : vector<8x8xf32>
    %cst_53 = arith.constant dense<0.000000e+00> : vector<8xf32>
    %117 = vector.multi_reduction <add>, %116, %cst_53 [1] : vector<8x8xf32> to vector<8xf32>
    %118 = vector.shape_cast %117 : vector<8xf32> to vector<8x1xf32>
    %119 = vector.broadcast %118 : vector<8x1xf32> to vector<8x8xf32>
    %120 = arith.divf %116, %119 : vector<8x8xf32>
    %121 = arith.truncf %120 : vector<8x8xf32> to vector<8x8xbf16>
    %cst_54 = arith.constant dense<0.000000e+00> : vector<8x8xf32>
    %122 = tpu.matmul %121, %106, %cst_54 {dimension_numbers = #tpu.dot_dimension_numbers<[1], [0], [0], [1], [0, 0, 1, 1], [], []>} : vector<8x8xbf16>, vector<8x8xbf16>, vector<8x8xf32> -> vector<8x8xf32>
    %123 = arith.truncf %122 : vector<8x8xf32> to vector<8x8xbf16>
    %c0_55 = arith.constant 0 : index
    %c0_56 = arith.constant 0 : index
    %c24 = arith.constant 24 : index
    %124 = vector.load %arg5[%c0_55, %c0_56, %c24] : memref<1x8x128xbf16, #tpu.memory_space<vmem>>, vector<1x8x8xbf16>
    %125 = vector.shape_cast %124 : vector<1x8x8xbf16> to vector<8x8xbf16>
    %126 = vector.shape_cast %123 : vector<8x8xbf16> to vector<1x8x8xbf16>
    tpu.vector_store %arg5[%c0_55, %c0_56, %c24], %126 {strides = array<i32>} : memref<1x8x128xbf16, #tpu.memory_space<vmem>>, vector<1x8x8xbf16>,
    %c0_57 = arith.constant 0 : index
    %c3 = arith.constant 3 : index
    %c0_58 = arith.constant 0 : index
    %c0_59 = arith.constant 0 : index
    %127 = vector.load %arg6[%c0_57, %c3, %c0_58, %c0_59] : memref<1x4x8x8xf32, #tpu.memory_space<vmem>>, vector<1x1x8x8xf32>
    %128 = vector.shape_cast %127 : vector<1x1x8x8xf32> to vector<8x8xf32>
    %129 = vector.shape_cast %120 : vector<8x8xf32> to vector<1x1x8x8xf32>
    tpu.vector_store %arg6[%c0_57, %c3, %c0_58, %c0_59], %129 {strides = array<i32>} : memref<1x4x8x8xf32, #tpu.memory_space<vmem>>, vector<1x1x8x8xf32>,
    return
  }
  func.func @transform_0(%arg0: i32) -> (i32, i32, i32) {
    %c0_i32 = arith.constant 0 : i32
    %c0_i32_0 = arith.constant 0 : i32
    %c0_i32_1 = arith.constant 0 : i32
    return %arg0, %c0_i32, %c0_i32_0 : i32, i32, i32
  }
  func.func @transform_1(%arg0: i32) -> (i32, i32) {
    %c0_i32 = arith.constant 0 : i32
    %c0_i32_0 = arith.constant 0 : i32
    %c0_i32_1 = arith.constant 0 : i32
    return %c0_i32, %c0_i32_0 : i32, i32
  }
  func.func @transform_2(%arg0: i32) -> (i32, i32) {
    %c0_i32 = arith.constant 0 : i32
    %c0_i32_0 = arith.constant 0 : i32
    %c0_i32_1 = arith.constant 0 : i32
    return %c0_i32, %c0_i32_0 : i32, i32
  }
  func.func @transform_3(%arg0: i32) -> (i32, i32, i32) {
    %c0_i32 = arith.constant 0 : i32
    %c0_i32_0 = arith.constant 0 : i32
    %c0_i32_1 = arith.constant 0 : i32
    return %arg0, %c0_i32, %c0_i32_0 : i32, i32, i32
  }
  func.func @transform_4(%arg0: i32) -> (i32, i32, i32) {
    %c0_i32 = arith.constant 0 : i32
    %c0_i32_0 = arith.constant 0 : i32
    %c0_i32_1 = arith.constant 0 : i32
    return %arg0, %c0_i32, %c0_i32_0 : i32, i32, i32
  }
  func.func @transform_5(%arg0: i32) -> (i32, i32, i32, i32) {
    %c0_i32 = arith.constant 0 : i32
    %c0_i32_0 = arith.constant 0 : i32
    %c0_i32_1 = arith.constant 0 : i32
    %c0_i32_2 = arith.constant 0 : i32
    return %arg0, %c0_i32, %c0_i32_0, %c0_i32_1 : i32, i32, i32, i32
  }
}

</mosaic_0001>

<bundles_post_ra>
// kernel: tpu_custom_call.1
= control target key start
LH: loop header
LB: loop body
LE: loop exit
PB: predicated region body
PF: predicated region fallthrough
CT: control target
= control target key end

     0   :  { %s1842_s0 = inlined_call_operand.hbm [shape: f32[2,8,128], index: 0, kind: input, shape index: {}]   ;;  %s1843_s1 = inlined_call_operand.hbm [shape: bf16[128,384], index: 1, kind: input, shape index: {}]   ;;  %s1844_s2 = inlined_call_operand.hbm [shape: f32[1,384], index: 2, kind: input, shape index: {}]   ;;  %s1845_s3 = inlined_call_operand.hbm [shape: bf16[2,8,8], index: 3, kind: input, shape index: {}]   ;;  %s1846_s4 = inlined_call_operand.hbm [shape: bf16[2,8,128], index: 4, kind: output, shape index: {0}]   ;;  %s1847_s5 = inlined_call_operand.hbm [shape: f32[2,4,8,8], index: 5, kind: output, shape index: {1}]  }
   0x1   :  { %1848 = sst [smem:[#allocation19_spill]] %s1843_s1 }
   0x2   :  { %1849 = sst [smem:[#allocation20_spill]] %s1844_s2 }
   0x3   :  { %11 = vsyncpa [#allocation3], 0 }
   0x4   :  { %13 = vsyncpa [#allocation3 + $0x1], 0 }
   0x5   :  { %14 = vsyncpa [#allocation6], 0 }
   0x6   :  { %15 = vsyncpa [#allocation9], 0 }
   0x7   :  { %17 = vsyncpa [#allocation9 + $0x1], 0 }
   0x8   :  { %18 = vsyncpa [#allocation4], 0 }
   0x9   :  { %20 = vsyncpa [#allocation4 + $0x1], 0 }
   0xa   :  { %21 = vsyncpa [#allocation12], 0 }
   0xb   :  { %23 = vsyncpa [#allocation12 + $0x1], 0  ;;  %s1565_s18 = smov 0   ;;  %s1567_s19 = smov 0  }
   0xc   :  { %s1569_s20 = smov 0   ;;  %s1571_s21 = smov 0  }
   0xd LB: > { %s1850_s1 = sld [smem:[#allocation19_spill]]  ;;  %s1589_s25 = sadd.s32 4294967295, %s1521_s21   ;;  %s1521_s21 = sphi %s1571_s21, %s1866_s21   ;;  %s1517_s20 = sphi %s1569_s20, %s1865_s20   ;;  %s1513_s19 = sphi %s1567_s19, %s1864_s19   ;;  %s1509_s18 = sphi %s1565_s18, %s1863_s18  }
   0xe   : > { %p1038_p0 = scmp.ge.s32.totalorder %s1521_s21, 1  ;;  %p50_p1 = scmp.eq.s32.totalorder %s1589_s25, 0 }
   0xf   : > { %p180_p2 = scmp.lt.s32.totalorder %s1521_s21, 3  ;;  %s1523_s27 = smov [#allocation5]  }
  0x10   : > { %s193_s28 = sshll.u32 %s1523_s27, 4  ;;  %s1852_s2 = sld [smem:[#allocation20_spill]]  ;;  %s194_s28 = int_to_ptr.vmem [resolvable:$true] %s193_s28 }
  0x11   : > { %p1594_p3 = pnand %p1038_p0, %p180_p2  ;;  %s1524_s7 = smov [#allocation7]  }
  0x12   : > { %s208_s8 = sshll.u32 %s1524_s7, 4  ;;  %s1525_s9 = smov 192   ;;  %s209_s8 = int_to_ptr.vmem [resolvable:$true] %s208_s8 }
  0x13   : > { %s191_s24 = sshll.u32 %s1850_s1, 4  ;;  %p1208_p4 = pneg %p1594_p3  ;;  %s192_s24 = int_to_ptr.hbm [resolvable:$true] %s191_s24 }
  0x14   : > { %s1526_s10 = smov 12   ;;  %s1037_s11 = sadd.s32 4294967294, %s1521_s21  }
  0x15   : > { %p1209_p6 = pnand %p1208_p4, %p50_p1  ;;  %s1608_s12 = sadd.s32 1, %s1521_s21  }
  0x16   : > { %s206_s6 = sshll.u32 %s1852_s2, 4  ;;  %s33_s13 = ssub.s32 %s1521_s21, %s1608_s12  ;;  %s207_s6 = int_to_ptr.hbm [resolvable:$true] %s206_s6 }
  0x17   : > { %1211 = dma.hbm_to_vmem [thread:$0]  (!%p1209_p6), %s192_s24, 3072, %s194_s28, [#allocation6], %s1525_s9, %s1525_s9, %s1526_s10  }
  0x18   : > { %1214 = dma.hbm_to_vmem [thread:$0]  (!%p1209_p6), %s207_s6, 48, %s209_s8, [#allocation6]  }
  0x19   : > { %s36_s14 = sadd.s32 1, %s1517_s20  ;;  %p34_p7 = scmp.eq.s32.totalorder %s33_s13, 0 }
  0x1a   : > { %p43_p8 = scmp.ne.s32.totalorder %s1517_s20, %s1513_s19  ;;  %p44_p9 = scmp.eq.s32.totalorder %s1521_s21, 0 }
  0x1b   : > { %p49_p10 = scmp.ne.s32.totalorder %s1513_s19, %s1509_s18  ;;  %p141_p13 = scmp.eq.s32.totalorder %s1589_s25, 1 }
  0x1c   : > { %s1619_s15 = scalar_select %p34_p7, %s1517_s20, %s36_s14  }
  0x1d   : > { %p1621_p11 = por %p44_p9, %p43_p8  ;;  %p1627_p12 = por %p50_p1, %p49_p10 }
  0x1e   : > { %1853 = sst [smem:[#allocation18_spill]] %s1619_s15  ;;  %p147_p0 = scmp.eq.s32.totalorder %s1037_s11, 1 }
  0x1f   : > { %p1231_p2 = scmp.lt.s32.totalorder %s1521_s21, 2  ;;  %s1634_s22 = sand.u32 1, %s1517_s20  }
  0x20   : > { %p1636_p4 = por %p141_p13, %p43_p8  ;;  %p1640_p6 = por %p147_p0, %p49_p10 }
  0x21   : > { %s1042_s27 = sshll.u32 %s1634_s22, 3  ;;  %s1043_s28 = sshll.u32 %s1521_s21, 3 }
  0x22   : > { %s227_s6 = scalar_lea.hbm %s1842_s0, %s1043_s28  ;;  %s223_s7 = scalar_lea.vmem [#allocation2], %s1042_s27 }
  0x23   : > { %s231_s8 = sshll.u32 %s223_s7, 4  ;;  %s229_s9 = sshll.u32 %s227_s6, 4  ;;  %s232_s8 = int_to_ptr.vmem [resolvable:$true] %s231_s8  ;;  %s230_s9 = int_to_ptr.hbm [resolvable:$true] %s229_s9 }
  0x24   : > { %p1651_p7 = pnand %p1231_p2, %p1621_p11  ;;  %s1044_s11 = sshll.u32 %s1634_s22, 2 }
  0x25   : > { %s220_s13 = scalar_lea.sflag [#allocation3], %s1634_s22  ;;  %s1355_s14 = sshra.s32 %s230_s9, 4  ;;  %s1356_s14 = int_to_ptr.hbm [resolvable:$true] %s1355_s14 }
  0x26   : > { %s1357_s1 = scalar_lea.hbm %s1356_s14, 8  ;;  %p1359_p9 = pneg %p1651_p7 }
  0x27   : > { %p1358_p8 = scmp.ne.s32.totalorder %s1356_s14, %s1357_s1  ;;  %s1362_s28 = scalar_lea.hbm %s1842_s0, 16 }
  0x28   : > { %p1363_p11 = scmp.lt.s32.totalorder %s1356_s14, %s1842_s0  ;;  %p1364_p0 = scmp.lt.s32.totalorder %s1362_s28, %s1357_s1 }
  0x29   : > { %p1360_p10 = pnand %p1359_p9, %p1358_p8 }
  0x2a   : > { %p1365_p2 = por %p1364_p0, %p1363_p11 }
  0x2b   : > { %p1361_p13 = pneg %p1360_p10 }
  0x2d   : > { %p1366_p5 = pnand %p1365_p2, %p1361_p13 }
  0x2f   : > { %1369 = shalt.err (!%p1366_p5)
}
  0x30   : > { %1218 = dma.hbm_to_vmem [thread:$0]  (!%p1651_p7), %s230_s9, 128, %s232_s8, %s220_s13  }
  0x31   : > { %s1045_s6 = sshll.u32 %s1521_s21, 2  ;;  %s242_s7 = scalar_lea.vmem [#allocation8], %s1044_s11 }
  0x32   : > { %s250_s2 = sshll.u32 %s242_s7, 4  ;;  %s246_s16 = scalar_lea.hbm %s1845_s3, %s1045_s6  ;;  %s251_s2 = int_to_ptr.vmem [resolvable:$true] %s250_s2 }
  0x33   : > { %s248_s29 = sshll.u32 %s246_s16, 4  ;;  %s239_s1 = scalar_lea.sflag [#allocation9], %s1634_s22  ;;  %s249_s29 = int_to_ptr.hbm [resolvable:$true] %s248_s29 }
  0x34   : > { %s1385_s14 = sshra.s32 %s249_s29, 4  ;;  %s1392_s11 = scalar_lea.hbm %s1845_s3, 8  ;;  %s1386_s14 = int_to_ptr.hbm [resolvable:$true] %s1385_s14 }
  0x35   : > { %s1387_s28 = scalar_lea.hbm %s1386_s14, 4  ;;  %p1393_p13 = scmp.lt.s32.totalorder %s1386_s14, %s1845_s3 }
  0x36   : > { %p1388_p5 = scmp.ne.s32.totalorder %s1386_s14, %s1387_s28  ;;  %p1394_p11 = scmp.lt.s32.totalorder %s1392_s11, %s1387_s28 }
  0x38   : > { %p1390_p8 = pnand %p1388_p5, %p1359_p9  ;;  %p1395_p0 = por %p1394_p11, %p1393_p13 }
  0x3a   : > { %p1391_p10 = pneg %p1390_p8 }
  0x3c   : > { %p1396_p2 = pnand %p1395_p0, %p1391_p10 }
  0x3e   : > { %1399 = shalt.err (!%p1396_p2)
}
  0x3f   : > { %1221 = dma.hbm_to_vmem [thread:$0]  (!%p1651_p7), %s249_s29, 64, %s251_s2, %s239_s1  }
  0x40   : > { %259 = sbr.rel (%p1594_p3) target bundleno = 1343 (0x53f), region = 36  ;;  %s1689_s15 = sand.u32 (!%p1594_p3), 1, %s1513_s19  }
  0x41   : > { %s1047_s22 = sshll.u32 (!%p1594_p3), %s1689_s15, 3  ;;  %s262_s6 = scalar_lea.sflag (!%p1594_p3), [#allocation3], %s1689_s15 }
  0x42   : > { %s1693_s7 = scalar_lea.vmem (!%p1594_p3), [#allocation2], %s1047_s22 }
  0x45   : > { %1488 = dma.done.wait (%p1627_p12), %s262_s6, 128  }
  0x46   : > { %1490 = vsyncadd (%p1627_p12), %s262_s6, 4294967168 }
  0x47   : > { %1492 = dma.done.wait (%p50_p1), [#allocation6], 3120  }
  0x48   : > { %1494 = vsyncadd (%p50_p1), [#allocation6], 4294964176  ;;  %s1050_s2 = sshll.u32 %s1689_s15, 2  ;;  %s282_s26 = scalar_lea.sflag [#allocation9], %s1689_s15 }
  0x49   : > { %s1707_s10 = scalar_lea.vmem [#allocation8], %s1050_s2 }
  0x4a   : > { %1496 = dma.done.wait (%p1627_p12), %s282_s26, 64  }
  0x4b   : > { %1498 = vsyncadd (%p1627_p12), %s282_s26, 4294967232  ;;  %v1139_v0 = vld [vmem:[#allocation5 + $0xa8] sm:$0xf]  ;;  %v1189_v1 = vld [vmem:[#allocation5 + $0xb0] sm:$0xf0]  ;;  %vm540_vm0 = vcmask 64512  }
  0x4c   : > { %v1188_v2 = vld [vmem:[#allocation5 + $0xac] sm:$0xf]  ;;  %v1140_v3 = vor.u32 %v1189_v1, %v1139_v0  ;;  %v1141_v4 = vld [vmem:[#allocation5 + $0xb4] sm:$0xf0]  ;;  %v1127_v5 = vld [vmem:[#allocation5 + $0x90] sm:$0xf] }
  0x4d   : > { %v1186_v6 = vld [vmem:[#allocation5 + $0x98] sm:$0xf0]  ;;  %v1144_v7 = vor.u32 %v1188_v2, %v1141_v4  ;;  %v1185_v8 = vld [vmem:[#allocation5 + $0x94] sm:$0xf]  ;;  %v1129_v9 = vld [vmem:[#allocation5 + $0x9c] sm:$0xf0] }
  0x4e   : > { %494 = vmatpush.bf16.msra.mxu0 %v1140_v3  ;;  %v1128_v10 = vor.u32 %v1186_v6, %v1127_v5  ;;  %v1132_v11 = vor.u32 %v1185_v8, %v1129_v9  ;;  %v1115_v12 = vld [vmem:[#allocation5 + $0x78] sm:$0xf]  ;;  %v1183_v13 = vld [vmem:[#allocation5 + $0x80] sm:$0xf0]  ;;  %v1182_v14 = vld [vmem:[#allocation5 + $0x7c] sm:$0xf] }
  0x4f   : > { %507 = vmatpush.bf16.msra.mxu1 %v1144_v7  ;;  %v1117_v15 = vld [vmem:[#allocation5 + $0x84] sm:$0xf0]  ;;  %v1116_v16 = vor.u32 %v1183_v13, %v1115_v12  ;;  %v1103_v18 = vld [vmem:[#allocation5 + $0x60] sm:$0xf]  ;;  %v1180_v19 = vld [vmem:[#allocation5 + $0x68] sm:$0xf0] }
  0x50   : > { %v1120_v17 = vor.u32 %v1182_v14, %v1117_v15  ;;  %v1179_v20 = vld [vmem:[#allocation5 + $0x64] sm:$0xf]  ;;  %v1105_v21 = vld [vmem:[#allocation5 + $0x6c] sm:$0xf0]  ;;  %v1104_v22 = vor.u32 %v1180_v19, %v1103_v18  ;;  %v1190_v24 = vld [vmem:[#allocation5 + $0xb8] sm:$0xf0] }
  0x51   : > { %v1147_v23 = vld [vmem:[#allocation5 + $0xb0] sm:$0xf]  ;;  %v1135_v25 = vld [vmem:[#allocation5 + $0x98] sm:$0xf]  ;;  %v1108_v26 = vor.u32 %v1179_v20, %v1105_v21  ;;  %v1091_v27 = vld [vmem:[#allocation5 + $0x48] sm:$0xf] }
  0x52   : > { %495 = vmatpush.bf16.msra.mxu0 %v1128_v10  ;;  %v1177_v28 = vld [vmem:[#allocation5 + $0x50] sm:$0xf0]  ;;  %v1148_v29 = vor.u32 %v1190_v24, %v1147_v23  ;;  %v1187_v30 = vld [vmem:[#allocation5 + $0xa0] sm:$0xf0]  ;;  %v1176_v31 = vld [vmem:[#allocation5 + $0x4c] sm:$0xf] }
  0x53   : > { %508 = vmatpush.bf16.msra.mxu1 %v1132_v11  ;;  %v1093_v32 = vld [vmem:[#allocation5 + $0x54] sm:$0xf0]  ;;  %v1136_v33 = vor.u32 %v1187_v30, %v1135_v25  ;;  %v1092_v34 = vor.u32 %v1177_v28, %v1091_v27  ;;  %v1123_v35 = vld [vmem:[#allocation5 + $0x80] sm:$0xf]  ;;  %v1184_v36 = vld [vmem:[#allocation5 + $0x88] sm:$0xf0] }
  0x54   : > { %520 = vmatpush.bf16.msra.mxu2 %v1148_v29  ;;  %v1096_v37 = vor.u32 %v1176_v31, %v1093_v32  ;;  %v1079_v38 = vld [vmem:[#allocation5 + $0x30] sm:$0xf]  ;;  %v1174_v39 = vld [vmem:[#allocation5 + $0x38] sm:$0xf0]  ;;  %v1173_v40 = vld [vmem:[#allocation5 + $0x34] sm:$0xf]  ;;  %v1124_v42 = vor.u32 %v1184_v36, %v1123_v35 }
  0x55   : > { %v1081_v41 = vld [vmem:[#allocation5 + $0x3c] sm:$0xf0]  ;;  %v1080_v43 = vor.u32 %v1174_v39, %v1079_v38  ;;  %v1111_v44 = vld [vmem:[#allocation5 + $0x68] sm:$0xf]  ;;  %v1181_v45 = vld [vmem:[#allocation5 + $0x70] sm:$0xf0] }
  0x56   : > { %496 = vmatpush.bf16.msra.mxu0 %v1116_v16  ;;  %v1084_v46 = vor.u32 %v1173_v40, %v1081_v41  ;;  %v1067_v47 = vld [vmem:[#allocation5 + $0x18] sm:$0xf]  ;;  %v1171_v48 = vld [vmem:[#allocation5 + $0x20] sm:$0xf0]  ;;  %v1170_v49 = vld [vmem:[#allocation5 + $0x1c] sm:$0xf]  ;;  %v1112_v51 = vor.u32 %v1181_v45, %v1111_v44 }
  0x57   : > { %509 = vmatpush.bf16.msra.mxu1 %v1120_v17  ;;  %v1069_v50 = vld [vmem:[#allocation5 + $0x24] sm:$0xf0]  ;;  %v1068_v52 = vor.u32 %v1171_v48, %v1067_v47  ;;  %v1099_v53 = vld [vmem:[#allocation5 + $0x50] sm:$0xf]  ;;  %v1178_v54 = vld [vmem:[#allocation5 + $0x58] sm:$0xf0] }
  0x58   : > { %521 = vmatpush.bf16.msra.mxu2 %v1136_v33  ;;  %v1072_v55 = vor.u32 %v1170_v49, %v1069_v50  ;;  %v1055_v56 = vld [vmem:[#allocation5] sm:$0xf]  ;;  %v1168_v57 = vld [vmem:[#allocation5 + $0x8] sm:$0xf0]  ;;  %v1167_v58 = vld [vmem:[#allocation5 + $0x4] sm:$0xf]  ;;  %v1100_v60 = vor.u32 %v1178_v54, %v1099_v53 }
  0x59   : > { %v1057_v59 = vld [vmem:[#allocation5 + $0xc] sm:$0xf0]  ;;  %v1056_v61 = vor.u32 %v1168_v57, %v1055_v56  ;;  %v1087_v63 = vld [vmem:[#allocation5 + $0x38] sm:$0xf]  ;;  %v1175_v0 = vld [vmem:[#allocation5 + $0x40] sm:$0xf0] }
  0x5a   : > { %497 = vmatpush.bf16.msra.mxu0 %v1104_v22  ;;  %v324_v62 = vld [vmem:[%s1693_s7] sm:$0xff]  ;;  %v1060_v1 = vor.u32 %v1167_v58, %v1057_v59  ;;  %v1088_v3 = vor.u32 %v1175_v0, %v1087_v63  ;;  %v1075_v4 = vld [vmem:[#allocation5 + $0x20] sm:$0xf]  ;;  %v1172_v5 = vld [vmem:[#allocation5 + $0x28] sm:$0xf0]  ;;  %s1527_s17 = smov 112  }
  0x5b   : > { %510 = vmatpush.bf16.msra.mxu1 %v1108_v26  ;;  %v325_v2 = vpack.c.bf16 %v324_v62, %v324_v62  ;;  %v1076_v6 = vor.u32 %v1172_v5, %v1075_v4  ;;  %v1063_v7 = vld [vmem:[#allocation5 + $0x8] sm:$0xf]  ;;  %v1169_v8 = vld [vmem:[#allocation5 + $0x10] sm:$0xf0]  ;;  %v358_v10 = vld [vmem:[#allocation7] sm:$0x7] }
  0x5c   : > { %522 = vmatpush.bf16.msra.mxu2 %v1124_v42  ;;  %v1064_v9 = vor.u32 %v1169_v8, %v1063_v7  ;;  %v361_v11 = vperm.slane %v358_v10, 1  ;;  %v360_v14 = vperm.slane %v358_v10, 0  ;;  %s1528_s27 = smov 120   ;;  %s1529_s16 = smov 104   ;;  %v362_v23 = vperm.slane %v358_v10, 2 }
  0x5d   : > { %vm590_vm1 = vcmask 1043456   ;;  %v533_v32 = vld [vmem:[%s1707_s10] sm:$0xf]  ;;  %s1052_s29 = sshll.u32 %s1689_s15, 5  ;;  %s1749_s14 = scalar_lea.vmem [#allocation10], %s1050_s2  ;;  %v1530_v63 = vmov 0  }
  0x5e   : > { %498 = vmatpush.bf16.msra.mxu0 %v1092_v34  ;;  %v534_v33 = vunpack.c.l.bf16 %v533_v32  ;;  %s1739_s1 = scalar_lea.vmem [#allocation11], %s1052_s29  ;;  %536 = vst [vmem:[%s1749_s14] sm:$0xf] %v1530_v63  ;;  %vm608_vm7 = vcmask 60416   ;;  %s1531_s28 = smov 8  }
  0x5f   : > { %511 = vmatpush.bf16.msra.mxu1 %v1096_v37  ;;  %s1191_s8 = sshll.u32 %s1589_s25, 5  ;;  %s1532_s9 = smov 24  }
  0x60   : > { %523 = vmatpush.bf16.msra.mxu2 %v1112_v51  ;;  %vm1728_vm2 = vcmp.gt.f32.partialorder %v534_v33, 0.5  ;;  %s885_s30 = scalar_lea.hbm %s1847_s5, %s1191_s8  ;;  %s886_s22 = sshll.u32 %s1739_s1, 4  ;;  %s887_s22 = int_to_ptr.vmem [resolvable:$true] %s886_s22 }
  0x61   : > { %s888_s6 = sshll.u32 %s885_s30, 4  ;;  %s860_s7 = scalar_lea.sflag [#allocation12], %s1689_s15  ;;  %s889_s6 = int_to_ptr.hbm [resolvable:$true] %s888_s6 }
  0x62   : > { %499 = vmatpush.bf16.msra.mxu0 %v1080_v43  ;;  %s1429_s2 = sshra.s32 %s889_s6, 4  ;;  %s1430_s2 = int_to_ptr.hbm [resolvable:$true] %s1429_s2 }
  0x63   : > { %512 = vmatpush.bf16.msra.mxu1 %v1084_v46  ;;  %s1431_s26 = scalar_lea.hbm %s1430_s2, 32  ;;  %p1436_p7 = scmp.lt.s32.totalorder %s1430_s2, %s1847_s5 }
  0x64   : > { %524 = vmatpush.bf16.msra.mxu2 %v1100_v60  ;;  %p1432_p1 = scmp.ne.s32.totalorder %s1430_s2, %s1431_s26 }
  0x66   : > { %500 = vmatpush.bf16.msra.mxu0 %v1068_v52  ;;  %p1433_p3 = pnand %p1432_p1, %p1636_p4 }
  0x67   : > { %513 = vmatpush.bf16.msra.mxu1 %v1072_v55 }
  0x68   : > { %525 = vmatpush.bf16.msra.mxu2 %v1088_v3  ;;  %p1434_p12 = pneg %p1433_p3 }
  0x6a   : > { %501 = vmatpush.bf16.msra.mxu0 %v1056_v61 }
  0x6b   : > { %514 = vmatpush.bf16.msra.mxu1 %v1060_v1 }
  0x6c   : > { %526 = vmatpush.bf16.msra.mxu2 %v1076_v6 }
  0x6d   : > { %502 = vmatmul.bf16.vlgmr.msra.gmra.mxu0 %v325_v2 }
  0x6e   : > { %515 = vmatmul.bf16.vlgmr.msra.gmra.mxu1 %v325_v2 }
  0x70   : > { %527 = vmatpush.bf16.msra.mxu2 %v1064_v9 }
  0x73   : > { %528 = vmatmul.bf16.vlgmr.msra.gmra.mxu2 %v325_v2 }
  0xea   : > { %v503_v12 = vpop.f32.mrf.mxu0 }
  0xeb   : > { %v516_v13 = vpop.f32.mrf.mxu1  ;;  %v504_v17 = vadd.f32 %v503_v12, %v360_v14 }
  0xec   : > { %v517_v15 = vadd.f32 %v516_v13, %v361_v11 }
  0xed   : > { %v537_v21 = vpack.c.bf16 %v504_v17, %v504_v17 }
  0xee   : > { %v538_v16 = vpack.c.bf16 %v517_v15, %v517_v15 }
  0xf0   : > { %696 = vrot.lane.b32.xlu2 %v538_v16, %s1527_s17  ;;  %615 = vrot.lane.b32.xlu1 %v538_v16, %s1528_s27  ;;  %v545_v18 = vsel %vm540_vm0, %v538_v16, 0 }
  0xf1   : > { %554 = vmatpush.bf16.xpose.msra.mxu3 %v545_v18 }
  0xf2   : > { %v505_v19 = vpop.f32.mrf.mxu0 }
  0xf3   : > { %v518_v20 = vpop.f32.mrf.mxu1 }
  0xf6   : > { %v529_v22 = vpop.f32.mrf.mxu2 }
  0xf7   : > { %v530_v24 = vadd.f32 %v529_v22, %v362_v23 }
  0xf8   : > { %776 = vrot.lane.b32.xlu2 %v538_v16, %s1529_s16  ;;  %612 = vrot.lane.b32.xlu1 %v537_v21, %s1528_s27 }
  0xf9   : > { %1149 = vmatmul.msk.bf16.vlgmr.msra.gmra.mxu3 %vm540_vm0, %v537_v21  ;;  %v1721_v26 = vpack.c.bf16 %v530_v24, %v530_v24 }
  0xfb   : > { %v592_v27 = vsel %vm590_vm1, %v1721_v26, 0 }
  0xfc   : > { %601 = vmatpush.bf16.msrb.mxu3 %v592_v27 }
  0xfe   : > { %v531_v25 = vpop.f32.mrf.mxu2 }
 0x100   : > { %774 = vrot.lane.b32.xlu1 %v537_v21, %s1529_s16 }
 0x14a   : > { %v697_v28 = vpop.permute.xlu2 %696 }
 0x14b   : > { %v702_v29 = vsel %vm540_vm0, %v697_v28, 0 }
 0x14c   : > { %711 = vmatpush.bf16.xpose.msrb.mxu1 %v702_v29 }
 0x152   : > { %v777_v57 = vpop.permute.xlu2 %776 }
 0x153   : > { %v782_v60 = vsel %vm540_vm0, %v777_v57, 0 }
 0x162   : > { %v616_v30 = vpop.permute.xlu1 %615 }
 0x163   : > { %v621_v31 = vsel %vm540_vm0, %v616_v30, 0 }
 0x164   : > { %630 = vmatpush.bf16.xpose.msra.mxu3 %v621_v31 }
 0x16a   : > { %v613_v61 = vpop.permute.xlu1 %612 }
 0x172   : > { %v775_v62 = vpop.permute.xlu1 %774 }
 0x17c   : > { %v556_v34 = vpop.f32.mrf.mxu3 }
 0x17d   : > { %v560_v36 = vmul.f32 0.35355338, %v556_v34 }
 0x17f   : > { %v561_v37 = vsel %vm1728_vm2, -1e+09, %v560_v36 }
 0x180   : > { %v562_v38 = vsel %vm540_vm0, %v561_v37, -inf }
 0x181   : > { %563 = vmax.xlane.f32.xlu0 %v562_v38 }
 0x184   : > { %v558_v39 = vpop.f32.mrf.mxu3 }
 0x1f4   : > { %v564_v40 = vpop.xlane.xlu0 %563 }
 0x1f5   : > { %v565_v41 = vsub.f32 %v561_v37, %v564_v40 }
 0x1f7   : > { %v566_v42 = vmul.f32 1.442695, %v565_v41 }
 0x1f9   : > { %1279 = vpow2.f32 %v566_v42 }
 0x1ff   : > { %v1280_v43 = vpop.eup %1279 }
 0x200   : > { %v568_v44 = vsel %vm540_vm0, %v1280_v43, 0.0 }
 0x201   : > { %569 = vadd.xlane.f32.xlu0 %v568_v44 }
 0x215   : > { %694 = vrot.lane.b32.xlu0 %v537_v21, %s1527_s17 }
 0x274   : > { %v570_v45 = vpop.xlane.xlu0 %569 }
 0x275   : > { %1281 = vrcp.f32 %v570_v45  ;;  %v582_v49 = vand.u32 2147483648, %v570_v45  ;;  %v580_v51 = vand.u32 2147483647, %v570_v45  ;;  %vm576_vm4 = vweird.f32 %v570_v45 }
 0x277   : > { %v583_v53 = vor.u32 1.1754944e-38, %v582_v49  ;;  %vm581_vm6 = vcmp.eq.f32.partialorder %v580_v51, 8.507059e+37 }
 0x27b   : > { %v1282_v46 = vpop.eup %1281 }
 0x27c   : > { %v572_v47 = vmul.f32 %v1282_v46, %v570_v45  ;;  %vm577_vm3 = vweird.f32 %v1282_v46 }
 0x27d   : > { %vm578_vm5 = vmor %vm576_vm4, %vm577_vm3 }
 0x27e   : > { %v573_v48 = vsub.f32 1.0, %v572_v47 }
 0x280   : > { %v574_v50 = vmul.f32 %v1282_v46, %v573_v48 }
 0x282   : > { %v575_v52 = vadd.f32 %v1282_v46, %v574_v50 }
 0x284   : > { %v579_v54 = vsel %vm578_vm5, %v1282_v46, %v575_v52 }
 0x285   : > { %v584_v55 = vsel %vm581_vm6, %v583_v53, %v579_v54 }
 0x286   : > { %v585_v56 = vmul.f32 %v1280_v43, %v584_v55 }
 0x287   : > { %v695_v58 = vpop.permute.xlu0 %694 }
 0x288   : > { %1154 = vmatmul.msk.bf16.vlgmr.msrb.gmra.mxu1 %vm540_vm0, %v695_v58  ;;  %v586_v59 = vpack.c.bf16 %v585_v56, %v585_v56  ;;  %610 = vst.msk [vmem:[%s1739_s1] sm:$0xff] %vm540_vm0, %v585_v56 }
 0x28a   : > { %1150 = vmatmul.msk.bf16.vlgmr.msrb.gmra.mxu3 %vm540_vm0, %v586_v59 }
 0x28b   : > { %791 = vmatpush.bf16.xpose.msrb.mxu3 %v782_v60 }
 0x29a   : > { %1151 = vmatmul.msk.bf16.vlgmr.msra.gmra.mxu3 %vm540_vm0, %v613_v61 }
 0x2aa   : > { %1157 = vmatmul.msk.bf16.vlgmr.msrb.gmra.mxu3 %vm540_vm0, %v775_v62 }
 0x305   : > { %v713_v0 = vpop.f32.mrf.mxu1 }
 0x306   : > { %v717_v1 = vmul.f32 0.35355338, %v713_v0 }
 0x308   : > { %v718_v2 = vsel %vm1728_vm2, -1e+09, %v717_v1 }
 0x309   : > { %v719_v3 = vsel %vm540_vm0, %v718_v2, -inf }
 0x30a   : > { %720 = vmax.xlane.f32.xlu1 %v719_v3 }
 0x30d   : > { %v603_v4 = vpop.f32.mrf.mxu3  ;;  %v715_v5 = vpop.f32.mrf.mxu1 }
 0x30e   : > { %v607_v6 = vpack.c.bf16 %v603_v4, %v603_v4 }
 0x310   : > { %609 = vst.msk [vmem:[%s1749_s14] sm:$0xf] %vm608_vm7, %v607_v6 }
 0x315   : > { %v605_v7 = vpop.f32.mrf.mxu3 }
 0x31d   : > { %v632_v8 = vpop.f32.mrf.mxu3 }
 0x31e   : > { %v636_v9 = vmul.f32 0.35355338, %v632_v8 }
 0x320   : > { %v637_v10 = vsel %vm1728_vm2, -1e+09, %v636_v9 }
 0x321   : > { %v638_v11 = vsel %vm540_vm0, %v637_v10, -inf }
 0x322   : > { %639 = vmax.xlane.f32.xlu2 %v638_v11 }
 0x325   : > { %v634_v12 = vpop.f32.mrf.mxu3 }
 0x32d   : > { %v793_v13 = vpop.f32.mrf.mxu3 }
 0x32e   : > { %v797_v14 = vmul.f32 0.35355338, %v793_v13 }
 0x330   : > { %v798_v15 = vsel %vm1728_vm2, -1e+09, %v797_v14 }
 0x331   : > { %v799_v16 = vsel %vm540_vm0, %v798_v15, -inf }
 0x332   : > { %800 = vmax.xlane.f32.xlu0 %v799_v16 }
 0x335   : > { %v795_v17 = vpop.f32.mrf.mxu3 }
 0x346   : > { %824 = vrot.lane.b32.xlu0 %v1721_v26, %s1529_s16 }
 0x37d   : > { %v721_v18 = vpop.xlane.xlu1 %720 }
 0x37e   : > { %v722_v19 = vsub.f32 %v718_v2, %v721_v18 }
 0x380   : > { %v723_v20 = vmul.f32 1.442695, %v722_v19 }
 0x382   : > { %1283 = vpow2.f32 %v723_v20 }
 0x388   : > { %v1284_v21 = vpop.eup %1283 }
 0x389   : > { %v725_v22 = vsel %vm540_vm0, %v1284_v21, 0.0 }
 0x38a   : > { %726 = vadd.xlane.f32.xlu2 %v725_v22 }
 0x395   : > { %v640_v23 = vpop.xlane.xlu2 %639 }
 0x396   : > { %v641_v24 = vsub.f32 %v637_v10, %v640_v23 }
 0x398   : > { %v642_v25 = vmul.f32 1.442695, %v641_v24 }
 0x39a   : > { %1285 = vpow2.f32 %v642_v25 }
 0x3a0   : > { %v1286_v27 = vpop.eup %1285 }
 0x3a1   : > { %v644_v28 = vsel %vm540_vm0, %v1286_v27, 0.0 }
 0x3a2   : > { %645 = vadd.xlane.f32.xlu2 %v644_v28 }
 0x3a5   : > { %v801_v29 = vpop.xlane.xlu0 %800 }
 0x3a6   : > { %v802_v30 = vsub.f32 %v798_v15, %v801_v29 }
 0x3a8   : > { %v803_v31 = vmul.f32 1.442695, %v802_v30 }
 0x3aa   : > { %1287 = vpow2.f32 %v803_v31 }
 0x3b0   : > { %v1766_v32 = vpop.eup %1287 }
 0x3b1   : > { %v805_v33 = vsel %vm540_vm0, %v1766_v32, 0.0 }
 0x3b2   : > { %806 = vadd.xlane.f32.xlu1 %v805_v33 }
 0x3b8   : > { %v825_v47 = vpop.permute.xlu0 %824 }
 0x3b9   : > { %v830_v51 = vsel %vm590_vm1, %v825_v47, 0 }
 0x3ba   : > { %664 = vrot.lane.b32.xlu2 %v1721_v26, %s1528_s27  ;;  %s1435_s27 = scalar_lea.hbm %s1847_s5, 64 }
 0x3bb   : > { %p1437_p9 = scmp.lt.s32.totalorder %s1435_s27, %s1431_s26 }
 0x3bd   : > { %p1438_p5 = por %p1437_p9, %p1436_p7 }
 0x3bf   : > { %p1439_p8 = pnand %p1438_p5, %p1434_p12 }
 0x3cb   : > { %744 = vrot.lane.b32.xlu1 %v1721_v26, %s1527_s17 }
 0x3fd   : > { %v727_v34 = vpop.xlane.xlu2 %726 }
 0x3fe   : > { %1289 = vrcp.f32 %v727_v34  ;;  %v739_v38 = vand.u32 2147483648, %v727_v34  ;;  %v737_v40 = vand.u32 2147483647, %v727_v34  ;;  %vm733_vm9 = vweird.f32 %v727_v34 }
 0x400   : > { %v740_v42 = vor.u32 1.1754944e-38, %v739_v38  ;;  %vm738_vm11 = vcmp.eq.f32.partialorder %v737_v40, 8.507059e+37 }
 0x404   : > { %v1290_v35 = vpop.eup %1289 }
 0x405   : > { %v729_v36 = vmul.f32 %v1290_v35, %v727_v34  ;;  %vm734_vm8 = vweird.f32 %v1290_v35 }
 0x406   : > { %vm735_vm10 = vmor %vm733_vm9, %vm734_vm8 }
 0x407   : > { %v730_v37 = vsub.f32 1.0, %v729_v36 }
 0x409   : > { %v731_v39 = vmul.f32 %v1290_v35, %v730_v37 }
 0x40b   : > { %v732_v41 = vadd.f32 %v1290_v35, %v731_v39 }
 0x40d   : > { %v736_v43 = vsel %vm735_vm10, %v1290_v35, %v732_v41 }
 0x40e   : > { %v741_v44 = vsel %vm738_vm11, %v740_v42, %v736_v43 }
 0x40f   : > { %v742_v45 = vmul.f32 %v1284_v21, %v741_v44 }
 0x411   : > { %1156 = vst.msk [vmem:[%s1739_s1 + $0x10] sm:$0xff] %vm540_vm0, %v742_v45  ;;  %v743_v13 = vpack.c.bf16 %v742_v45, %v742_v45 }
 0x415   : > { %v646_v26 = vpop.xlane.xlu2 %645 }
 0x416   : > { %1291 = vrcp.f32 %v646_v26  ;;  %v658_v54 = vand.u32 2147483648, %v646_v26  ;;  %v656_v55 = vand.u32 2147483647, %v646_v26  ;;  %vm652_vm13 = vweird.f32 %v646_v26 }
 0x418   : > { %v659_v58 = vor.u32 1.1754944e-38, %v658_v54  ;;  %vm657_vm15 = vcmp.eq.f32.partialorder %v656_v55, 8.507059e+37 }
 0x41c   : > { %v1292_v46 = vpop.eup %1291 }
 0x41d   : > { %v648_v48 = vmul.f32 %v1292_v46, %v646_v26  ;;  %v665_v49 = vpop.permute.xlu2 %664  ;;  %vm653_vm12 = vweird.f32 %v1292_v46 }
 0x41e   : > { %v670_v50 = vsel %vm590_vm1, %v665_v49, 0  ;;  %vm654_vm14 = vmor %vm652_vm13, %vm653_vm12 }
 0x41f   : > { %v649_v52 = vsub.f32 1.0, %v648_v48  ;;  %679 = vmatpush.bf16.msrb.mxu0 %v670_v50 }
 0x421   : > { %v650_v53 = vmul.f32 %v1292_v46, %v649_v52 }
 0x423   : > { %839 = vmatpush.bf16.msra.mxu0 %v830_v51  ;;  %v651_v56 = vadd.f32 %v1292_v46, %v650_v53 }
 0x425   : > { %v655_v57 = vsel %vm654_vm14, %v1292_v46, %v651_v56  ;;  %v807_v59 = vpop.xlane.xlu1 %806 }
 0x426   : > { %1293 = vrcp.f32 %v807_v59  ;;  %v660_v60 = vsel %vm657_vm15, %v659_v58, %v655_v57  ;;  %v819_v2 = vand.u32 2147483648, %v807_v59  ;;  %v817_v4 = vand.u32 2147483647, %v807_v59 }
 0x427   : > { %v661_v61 = vmul.f32 %v1286_v27, %v660_v60  ;;  %vm813_vm3 = vweird.f32 %v807_v59 }
 0x428   : > { %v820_v6 = vor.u32 1.1754944e-38, %v819_v2  ;;  %vm818_vm5 = vcmp.eq.f32.partialorder %v817_v4, 8.507059e+37 }
 0x429   : > { %v662_v62 = vpack.c.bf16 %v661_v61, %v661_v61  ;;  %1153 = vst.msk [vmem:[%s1739_s1 + $0x8] sm:$0xff] %vm540_vm0, %v661_v61 }
 0x42b   : > { %1152 = vmatmul.msk.bf16.vlgmr.msrb.gmra.mxu0 %vm540_vm0, %v662_v62 }
 0x42c   : > { %v1294_v63 = vpop.eup %1293 }
 0x42d   : > { %v809_v0 = vmul.f32 %v1294_v63, %v807_v59  ;;  %vm814_vm2 = vweird.f32 %v1294_v63 }
 0x42e   : > { %vm815_vm4 = vmor %vm813_vm3, %vm814_vm2 }
 0x42f   : > { %v810_v1 = vsub.f32 1.0, %v809_v0 }
 0x431   : > { %v811_v3 = vmul.f32 %v1294_v63, %v810_v1 }
 0x433   : > { %v812_v5 = vadd.f32 %v1294_v63, %v811_v3 }
 0x435   : > { %v816_v7 = vsel %vm815_vm4, %v1294_v63, %v812_v5 }
 0x436   : > { %v821_v8 = vsel %vm818_vm5, %v820_v6, %v816_v7 }
 0x437   : > { %v822_v9 = vmul.f32 %v1766_v32, %v821_v8 }
 0x439   : > { %1159 = vst.msk [vmem:[%s1739_s1 + $0x18] sm:$0xff] %vm540_vm0, %v822_v9  ;;  %v823_v10 = vpack.c.bf16 %v822_v9, %v822_v9 }
 0x43b   : > { %1158 = vmatmul.msk.bf16.vlgmr.msra.gmra.mxu0 %vm540_vm0, %v823_v10 }
 0x43d   : > { %v745_v11 = vpop.permute.xlu1 %744 }
 0x43e   : > { %v750_v12 = vsel %vm590_vm1, %v745_v11, 0 }
 0x43f   : > { %759 = vmatpush.bf16.msrb.mxu2 %v750_v12 }
 0x442   : > { %1155 = vmatmul.msk.bf16.vlgmr.msrb.gmra.mxu2 %vm540_vm0, %v743_v13 }
 0x4a8   : > { %v681_v14 = vpop.f32.mrf.mxu0 }
 0x4a9   : > { %v685_v15 = vpack.c.bf16 %v681_v14, %v681_v14 }
 0x4ab   : > { %687 = vrot.lane.b32.xlu2 %v685_v15, %s1531_s28 }
 0x4b0   : > { %v683_v16 = vpop.f32.mrf.mxu0 }
 0x4b8   : > { %v841_v17 = vpop.f32.mrf.mxu0 }
 0x4b9   : > { %v845_v18 = vpack.c.bf16 %v841_v17, %v841_v17 }
 0x4bb   : > { %847 = vrot.lane.b32.xlu1 %v845_v18, %s1532_s9 }
 0x4c0   : > { %v843_v19 = vpop.f32.mrf.mxu0 }
 0x4c1   : > { %1442 = shalt.err (!%p1439_p8)
}
 0x4c2   : > { %s1533_s1 = smov 128   ;;  %s1534_s8 = smov 16   ;;  %vm690_vm0 = vcmask 126016   ;;  %vm770_vm1 = vcmask 191616   ;;  %vm850_vm6 = vcmask 257216  }
 0x4c3   : > { %1205 = dma.vmem_to_hbm [thread:$0]  (%p1636_p4), %s887_s22, 512, %s889_s6, %s860_s7, %s1533_s1, %s1533_s1, %s1531_s28  }
 0x4c4   : > { %s1162_s9 = sshll.u32 %s1589_s25, 2  ;;  %s872_s2 = sshll.u32 %s1749_s14, 4  ;;  %s873_s2 = int_to_ptr.vmem [resolvable:$true] %s872_s2 }
 0x4c5   : > { %v761_v20 = vpop.f32.mrf.mxu2  ;;  %s870_s30 = scalar_lea.hbm %s1846_s4, %s1162_s9  ;;  %s855_s28 = scalar_lea.sflag [#allocation4], %s1689_s15 }
 0x4c6   : > { %v765_v21 = vpack.c.bf16 %v761_v20, %v761_v20  ;;  %s874_s26 = sshll.u32 %s870_s30, 4  ;;  %s1463_s10 = scalar_lea.hbm %s1846_s4, 8  ;;  %s875_s26 = int_to_ptr.hbm [resolvable:$true] %s874_s26 }
 0x4c7   : > { %s1457_s22 = sshra.s32 %s875_s26, 4  ;;  %s1458_s22 = int_to_ptr.hbm [resolvable:$true] %s1457_s22 }
 0x4c8   : > { %767 = vrot.lane.b32.xlu0 %v765_v21, %s1534_s8  ;;  %s1459_s6 = scalar_lea.hbm %s1458_s22, 4  ;;  %p1464_p0 = scmp.lt.s32.totalorder %s1458_s22, %s1846_s4 }
 0x4c9   : > { %p1460_p10 = scmp.ne.s32.totalorder %s1458_s22, %s1459_s6  ;;  %p1465_p2 = scmp.lt.s32.totalorder %s1463_s10, %s1459_s6 }
 0x4cb   : > { %p1461_p13 = pnand %p1460_p10, %p1636_p4  ;;  %p1466_p1 = por %p1465_p2, %p1464_p0 }
 0x4cd   : > { %v763_v22 = vpop.f32.mrf.mxu2  ;;  %p1462_p11 = pneg %p1461_p13 }
 0x4cf   : > { %p1467_p3 = pnand %p1466_p1, %p1462_p11 }
 0x505   : > { %v688_v23 = vpop.permute.xlu2 %687 }
 0x506   : > { %691 = vst.msk [vmem:[%s1749_s14] sm:$0xf] %vm690_vm0, %v688_v23 }
 0x52d   : > { %v848_v25 = vpop.permute.xlu1 %847 }
 0x53a   : > { %v768_v24 = vpop.permute.xlu0 %767 }
 0x53b   : > { %771 = vst.msk [vmem:[%s1749_s14] sm:$0xf] %vm770_vm1, %v768_v24 }
 0x53c   : > { %851 = vst.msk [vmem:[%s1749_s14] sm:$0xf] %vm850_vm6, %v848_v25 }
 0x53d   : > { %1470 = shalt.err (!%p1467_p3)
}
 0x53e   : > { %1204 = dma.vmem_to_hbm [thread:$0]  (%p1636_p4), %s873_s2, 64, %s875_s26, %s855_s28  }
 0x53f PF: > { %s903_s15 = sand.u32 1, %s1509_s18   ;;  %p1861_p12 = scmp.ge.s32.totalorder %s1521_s21, 2 }
 0x540   : > { %s904_s14 = scalar_lea.sflag [#allocation4], %s903_s15 }
 0x541   : > { %p1223_p7 = pnand %p1861_p12, %p1640_p6 }
 0x543   : > { %p1224_p9 = pneg %p1223_p7 }
 0x545   : > { %1500 = dma.done.wait (%p1224_p9), %s904_s14, 64  }
 0x546   : > { %1502 = vsyncadd (%p1224_p9), %s904_s14, 4294967232  ;;  %s914_s16 = scalar_lea.sflag [#allocation12], %s903_s15 }
 0x547   : > { %1504 = dma.done.wait (%p1224_p9), %s914_s16, 512  }
 0x548   : > { %1506 = vsyncadd (%p1224_p9), %s914_s16, 4294966784  ;;  %s1862_s23 = sld [smem:[#allocation18_spill]]  ;;  %p26_p4 = scmp.ge.s32.totalorder %s1608_s12, 4  }
 0x549   : > { %s1863_s18 = smov %s1513_s19  ;;  %s1864_s19 = smov %s1517_s20 }
 0x54a   : > { %s1866_s21 = smov %s1608_s12  ;;  %28 = sbr.rel (!%p26_p4) target bundleno = 13 (0xd), region = 122 }
 0x54e   : > { %s1865_s20 = smov %s1862_s23 }
 0x54f   :  { %920 = vsyncpa [#allocation3], 1 }
 0x550   :  { %922 = vsyncpa [#allocation3 + $0x1], 1 }
 0x551   :  { %923 = vsyncpa [#allocation6], 1 }
 0x552   :  { %924 = vsyncpa [#allocation9], 1 }
 0x553   :  { %926 = vsyncpa [#allocation9 + $0x1], 1 }
 0x554   :  { %927 = vsyncpa [#allocation4], 1 }
 0x555   :  { %929 = vsyncpa [#allocation4 + $0x1], 1 }
 0x556   :  { %930 = vsyncpa [#allocation12], 1 }
 0x557   :  { %932 = vsyncpa [#allocation12 + $0x1], 1 }

</bundles_post_ra>
